<compile_context>
chip_gen: v7x
topology: tpu7x:2x2x1
jax: 0.10.0
libtpu: 0.0.40
codegen_flags: <defaults>
</compile_context>

<pallas_src>
import jax
import jax.numpy as jnp
from jax.experimental import pallas as pl
from jax.experimental.pallas import tpu as pltpu


def _pn_kernel(x_ref, gain_ref, bias_ref, o_ref):
    # x_ref/o_ref block: (TILE_R, TILE_C); gain/bias block broadcasts over the
    # other axis ((TILE_R, 1) in the row path, (1, TILE_C) in the small-HW path).
    xv = x_ref[...].astype(jnp.float32)
    o_ref[...] = (xv * gain_ref[...] + bias_ref[...]).astype(o_ref.dtype)


def _sublane_align(itemsize):
    # Native sublane packing per dtype: 8 for f32, 16 for bf16, 32 for int8/fp8.
    return max(8, 32 // max(itemsize, 1))


def _pick_tiles(rows, cols, itemsize, row_align, target_bytes=2 * 1024 * 1024):
    """Pick (tile_r, tile_c): lane axis grows first, ~target_bytes per block."""
    target_elems = max(target_bytes // itemsize, 128 * row_align)

    # Lane (last) axis: full extent if it fits the budget with >= one sublane
    # group of rows, else the widest multiple of 128 within the budget.
    if cols * row_align <= target_elems:
        tile_c = cols
    else:
        tile_c = min((target_elems // row_align) // 128 * 128, 8192)
        tile_c = max(tile_c, 128)

    # Row axis: fill the remaining budget, aligned to native sublane packing.
    rows_budget = max(target_elems // tile_c, row_align)
    if rows <= rows_budget:
        tile_r = rows
    else:
        tile_r = max((rows_budget // row_align) * row_align, row_align)
    return tile_r, tile_c


def pn_forward(x, mu, var, scale, shift, eps=1e-5):
    """x: (N, C, H, W). Params: (C,). Returns (N, C, H, W), same dtype as x."""
    N, C, H, W = x.shape
    HW = H * W

    # Fold the per-channel affine once, in f32 (C-element ops; negligible).
    gain = (scale.astype(jnp.float32)
            * jax.lax.rsqrt(var.astype(jnp.float32) + jnp.float32(eps)))
    bias = shift.astype(jnp.float32) - mu.astype(jnp.float32) * gain

    itemsize = jnp.dtype(x.dtype).itemsize
    row_align = _sublane_align(itemsize)

    if HW >= 128:
        # Main path: one (n, c) pair per row, HW on the lane axis (row-major
        # reshape is free). Params broadcast along rows.
        rows, cols = N * C, HW
        x2 = x.reshape(rows, cols)
        gain_p = jnp.tile(gain, (N,)).reshape(rows, 1)
        bias_p = jnp.tile(bias, (N,)).reshape(rows, 1)
        tile_r, tile_c = _pick_tiles(rows, cols, itemsize, row_align)
        param_block = (tile_r, 1)
        param_map = lambda i, j: (i, 0)   # invariant along innermost axis j
    else:
        # Small-spatial path: merge C and HW so the last dim is lane-dense,
        # with per-element params broadcast along the (batch) row axis.
        rows, cols = N, C * HW
        x2 = x.reshape(rows, cols)
        gain_p = jnp.repeat(gain, HW).reshape(1, cols)
        bias_p = jnp.repeat(bias, HW).reshape(1, cols)
        tile_r, tile_c = _pick_tiles(rows, cols, itemsize, row_align)
        param_block = (1, tile_c)
        param_map = lambda i, j: (0, j)

    grid = (pl.cdiv(rows, tile_r), pl.cdiv(cols, tile_c))

    data_spec = pl.BlockSpec((tile_r, tile_c), lambda i, j: (i, j))
    param_spec = pl.BlockSpec(param_block, param_map)

    n_elems = rows * cols
    cost = pl.CostEstimate(
        flops=2 * n_elems,
        transcendentals=0,
        bytes_accessed=2 * n_elems * itemsize + 8 * gain_p.size,
    )

    out = pl.pallas_call(
        _pn_kernel,
        out_shape=jax.ShapeDtypeStruct((rows, cols), x.dtype),
        grid_spec=pltpu.PrefetchScalarGridSpec(
            num_scalar_prefetch=0,
            grid=grid,
            in_specs=[data_spec, param_spec, param_spec],
            out_specs=data_spec,
        ),
        compiler_params=pltpu.CompilerParams(
            dimension_semantics=("parallel", "parallel"),
        ),
        cost_estimate=cost,
    )(x2, gain_p, bias_p)

    return out.reshape(N, C, H, W)


if __name__ == "__main__":
    key = jax.random.PRNGKey(0)
    kx, kmu, kvar, ksc, ksh = jax.random.split(key, 5)

    N, C, H, W = 2, 4, 16, 16
    eps = 1e-5

    x = jax.random.normal(kx, (N, C, H, W), dtype=jnp.float32)

    # Deterministic parameter init (perturbations around the module's
    # zeros/ones init so the math is exercised non-trivially).
    mu = 0.1 * jax.random.normal(kmu, (C,), dtype=jnp.float32)
    var = 1.0 + 0.1 * jnp.abs(jax.random.normal(kvar, (C,), dtype=jnp.float32))
    scale = 1.0 + 0.1 * jax.random.normal(ksc, (C,), dtype=jnp.float32)
    shift = 0.1 * jax.random.normal(ksh, (C,), dtype=jnp.float32)

    y = pn_forward(x, mu, var, scale, shift, eps=eps)
    y = jax.block_until_ready(y)

    # Pure-JAX reference (mirrors the PyTorch forward exactly).
    mu_b = mu.reshape(1, C, 1, 1)
    var_b = var.reshape(1, C, 1, 1)
    sc_b = scale.reshape(1, C, 1, 1)
    sh_b = shift.reshape(1, C, 1, 1)
    y_ref = sc_b * (x - mu_b) / jnp.sqrt(var_b + eps) + sh_b

    assert y.shape == (N, C, H, W)
    assert jnp.allclose(y, y_ref, atol=1e-5, rtol=1e-5), "mismatch vs reference"

    print("KERNEL_OK")
</pallas_src>

<mosaic_0001>
module attributes {stable_mosaic.version = 11 : i64} {
  func.func @_pn_kernel(%arg0: i32, %arg1: i32, %arg2: memref<8x256xf32, #tpu.memory_space<vmem>>, %arg3: memref<8x1xf32, #tpu.memory_space<vmem>>, %arg4: memref<8x1xf32, #tpu.memory_space<vmem>>, %arg5: memref<8x256xf32, #tpu.memory_space<vmem>>) attributes {dimension_semantics = [#tpu.dimension_semantics<parallel>, #tpu.dimension_semantics<parallel>], iteration_bounds = array<i64: 1, 1>, scalar_prefetch = 0 : i64, scratch_operands = 0 : i64, tpu.core_type = #tpu.core_type<tc>, window_params = [{transform_indices = @transform_0, window_bounds = array<i64: 8, 256>}, {transform_indices = @transform_1, window_bounds = array<i64: 8, 1>}, {transform_indices = @transform_2, window_bounds = array<i64: 8, 1>}, {transform_indices = @transform_3, window_bounds = array<i64: 8, 256>}]} {
    %c0 = arith.constant 0 : index
    %c0_0 = arith.constant 0 : index
    %0 = vector.load %arg2[%c0, %c0_0] : memref<8x256xf32, #tpu.memory_space<vmem>>, vector<8x256xf32>
    %c0_1 = arith.constant 0 : index
    %c0_2 = arith.constant 0 : index
    %1 = vector.load %arg3[%c0_1, %c0_2] : memref<8x1xf32, #tpu.memory_space<vmem>>, vector<8x1xf32>
    %2 = vector.broadcast %1 : vector<8x1xf32> to vector<8x256xf32>
    %3 = arith.mulf %0, %2 : vector<8x256xf32>
    %c0_3 = arith.constant 0 : index
    %c0_4 = arith.constant 0 : index
    %4 = vector.load %arg4[%c0_3, %c0_4] : memref<8x1xf32, #tpu.memory_space<vmem>>, vector<8x1xf32>
    %5 = vector.broadcast %4 : vector<8x1xf32> to vector<8x256xf32>
    %6 = arith.addf %3, %5 : vector<8x256xf32>
    %c0_5 = arith.constant 0 : index
    %c0_6 = arith.constant 0 : index
    %7 = vector.load %arg5[%c0_5, %c0_6] : memref<8x256xf32, #tpu.memory_space<vmem>>, vector<8x256xf32>
    tpu.vector_store %arg5[%c0_5, %c0_6], %6 {strides = array<i32>} : memref<8x256xf32, #tpu.memory_space<vmem>>, vector<8x256xf32>,
    return
  }
  func.func @transform_0(%arg0: i32, %arg1: i32) -> (i32, i32) {
    %c0_i32 = arith.constant 0 : i32
    return %arg0, %arg1 : i32, i32
  }
  func.func @transform_1(%arg0: i32, %arg1: i32) -> (i32, i32) {
    %c0_i32 = arith.constant 0 : i32
    %c0_i32_0 = arith.constant 0 : i32
    return %arg0, %c0_i32 : i32, i32
  }
  func.func @transform_2(%arg0: i32, %arg1: i32) -> (i32, i32) {
    %c0_i32 = arith.constant 0 : i32
    %c0_i32_0 = arith.constant 0 : i32
    return %arg0, %c0_i32 : i32, i32
  }
  func.func @transform_3(%arg0: i32, %arg1: i32) -> (i32, i32) {
    %c0_i32 = arith.constant 0 : i32
    return %arg0, %arg1 : i32, i32
  }
}

</mosaic_0001>

<bundles_post_ra>
// kernel: tpu_custom_call.1
= control target key start
LH: loop header
LB: loop body
LE: loop exit
PB: predicated region body
PF: predicated region fallthrough
CT: control target
= control target key end

     0   :  { %s122_s0 = inlined_call_operand.vmem [shape: f32[8,256], index: 0, kind: input, shape index: {}]   ;;  %s123_s1 = inlined_call_operand.vmem [shape: f32[8,1], index: 1, kind: input, shape index: {}]   ;;  %s124_s2 = inlined_call_operand.vmem [shape: f32[8,1], index: 2, kind: input, shape index: {}]   ;;  %s125_s3 = inlined_call_operand.hbm [shape: f32[8,256], index: 3, kind: output, shape index: {}]  }
   0x1   :  { %v17_v0 = vld [vmem:[%s123_s1] sm:$0xff] }
   0x2   :  { %8 = vsyncpa [#allocation3], 0  ;;  %v76_v1 = vmov 0   ;;  %v25_v2 = vld [vmem:[%s124_s2] sm:$0xff]  ;;  %v16_v5 = vld [vmem:[%s122_s0 + $0x8] sm:$0xff]  ;;  %s77_s20 = smov [#allocation2]  }
   0x3   :  { %51 = vset.pattern.permute.xlu0 %v76_v1  ;;  %v15_v4 = vld [vmem:[%s122_s0] sm:$0xff]  ;;  %s41_s1 = sshll.u32 %s77_s20, 4  ;;  %s42_s1 = int_to_ptr.vmem [resolvable:$true] %s41_s1 }
   0x4   :  { %20 = vperm.xlu0 %51, %v17_v0   ;;  %s52_s2 = scalar_lea.vmem %s42_s1, 256  ;;  %p57_p1 = scmp.lt.s32.totalorder %s42_s1, %s42_s1 }
   0x5   :  { %p53_p0 = scmp.ne.s32.totalorder %s42_s1, %s52_s2  ;;  %p58_p2 = scmp.lt.s32.totalorder %s52_s2, %s52_s2 }
   0x7   :  { %p59_p3 = por %p58_p2, %p57_p1 }
   0x8   :  { %28 = vperm.xlu0 %51, %v25_v2  }
   0x9   :  { %p60_p4 = pnand %p59_p3, %p53_p0 }
  0x83   :  { %v21_v3 = vpop.permute.xlu0 %20 }
  0x84   :  { %v23_v6 = vmul.f32 %v21_v3, %v15_v4  ;;  %v24_v7 = vmul.f32 %v21_v3, %v16_v5 }
  0x87   :  { %v29_v8 = vpop.permute.xlu0 %28 }
  0x88   :  { %v31_v9 = vadd.f32 %v29_v8, %v23_v6  ;;  %v32_v10 = vadd.f32 %v29_v8, %v24_v7 }
  0x8a   :  { %33 = vst [vmem:[#allocation2] sm:$0xff] %v31_v9  ;;  %34 = vst [vmem:[#allocation2 + $0x8] sm:$0xff] %v32_v10 }
  0x8b   :  { %63 = shalt.err (!%p60_p4)
}
  0x8c   :  { %s64_s0 = scalar_lea.hbm %s125_s3, 256 }
  0x8d   :  { %p65_p5 = scmp.ne.s32.totalorder %s125_s3, %s64_s0  ;;  %p68_p6 = scmp.lt.u32.totalorder %s64_s0, %s125_s3 }
  0x8f   :  { %p70_p7 = pnand %p68_p6, %p65_p5 }
  0x91   :  { %73 = shalt.err (!%p70_p7)
}
  0x92   :  { %44 = dma.vmem_to_hbm [thread:$0]  %s42_s1, 256, %s125_s3, [#allocation3]  }
  0x93   :  { %74 = dma.done.wait [#allocation3], 256  }
  0x94   :  { %75 = vsyncadd [#allocation3], 4294967040 }
  0x95   :  { %48 = vsyncpa [#allocation3], 1 }

</bundles_post_ra>
